<compile_context>
chip_gen: v7x
topology: tpu7x:2x2x1
jax: 0.10.0
libtpu: 0.0.40
codegen_flags: <defaults>
</compile_context>

<pallas_src>
import jax
import jax.numpy as jnp
from jax import lax
from jax.experimental import pallas as pl
from jax.experimental.pallas import tpu as pltpu

LANES = 128
SUBLANES = 8
_VMEM_LIMIT_BYTES = 48 * 1024 * 1024  # > v5e 16 MiB scoped default, < v7x 64 MiB physical


def _make_mask4_kernel(tile_rows, rows_total, needs_mask):
    groups = tile_rows // SUBLANES

    def _partials(x, y, m, mask_tail):
        # Matches torch op order exactly: (x*mask) - (y*mask), then |.|
        abs_masked = jnp.abs(x * m - y * m)
        abs_plain = jnp.abs(x - y)
        if mask_tail:
            i = pl.program_id(0)
            row = lax.broadcasted_iota(jnp.int32, (tile_rows, LANES), 0)
            valid = (i * tile_rows + row) < rows_total
            abs_masked = jnp.where(valid, abs_masked, 0.0)
            abs_plain = jnp.where(valid, abs_plain, 0.0)
        # Reduce tile -> (8, 128) partials using sublane-group adds (VPU only).
        part_masked = jnp.sum(abs_masked.reshape(groups, SUBLANES, LANES), axis=0)
        part_plain = jnp.sum(abs_plain.reshape(groups, SUBLANES, LANES), axis=0)
        return part_masked, part_plain

    def kernel(x_ref, y_ref, m_ref, out_ref):
        x = x_ref[...].astype(jnp.float32)
        y = y_ref[...].astype(jnp.float32)
        m = m_ref[...].astype(jnp.float32)

        # Unmasked partials for every block (single merged lane-dense store).
        pm, pp = _partials(x, y, m, False)
        out_ref[0, 0:SUBLANES, :] = pm
        out_ref[0, SUBLANES:2 * SUBLANES, :] = pp

        if needs_mask:
            # Only the final (edge) block contains out-of-bounds garbage rows:
            # recompute with the row-validity select and overwrite its slot.
            @pl.when(pl.program_id(0) == pl.num_programs(0) - 1)
            def _():
                pm_t, pp_t = _partials(x, y, m, True)
                out_ref[0, 0:SUBLANES, :] = pm_t
                out_ref[0, SUBLANES:2 * SUBLANES, :] = pp_t

    return kernel


def _as_rows(a, rows, n_elem):
    flat = a.reshape(-1)
    rem = rows * LANES - n_elem
    if rem:
        # Only hit when total size isn't a multiple of 128 (< 128 zeros appended;
        # zeros contribute 0 to both |.| sums, so no extra lane mask is needed).
        flat = jnp.pad(flat, (0, rem))
    return flat.reshape(rows, LANES)


def mask4_loss(x, y, mask, *, tile_rows=8192):
    """loss = mean(|x*mask - y*mask|) + 0.1 * mean(|x - y|)."""
    n_elem = x.size
    rows = (n_elem + LANES - 1) // LANES

    # Clamp tile to the array, keep it a multiple of 8 sublanes, and cap it so
    # the "parallel" grid has >= 2 blocks (keeps both v7x TensorCores fed).
    tr = min(int(tile_rows), rows)
    if rows > SUBLANES:
        half = -(-rows // 2)
        half = ((half + SUBLANES - 1) // SUBLANES) * SUBLANES
        tr = min(tr, half)
    tr = ((tr + SUBLANES - 1) // SUBLANES) * SUBLANES
    tile = max(SUBLANES, tr)

    num_blocks = -(-rows // tile)
    needs_mask = (rows % tile) != 0

    x2 = _as_rows(x, rows, n_elem)
    y2 = _as_rows(y, rows, n_elem)
    m2 = _as_rows(mask, rows, n_elem)

    in_spec = pl.BlockSpec((tile, LANES), lambda i: (i, 0))
    out_spec = pl.BlockSpec((1, 2 * SUBLANES, LANES), lambda i: (i, 0, 0))

    out_bytes = num_blocks * 2 * SUBLANES * LANES * 4
    cost = pl.CostEstimate(
        flops=8 * n_elem,                      # 2 mul, 2 sub, 2 abs, ~2 adds per elem
        transcendentals=0,
        bytes_accessed=3 * 4 * n_elem + out_bytes,
    )

    parts = pl.pallas_call(
        _make_mask4_kernel(tile, rows, needs_mask),
        out_shape=jax.ShapeDtypeStruct((num_blocks, 2 * SUBLANES, LANES), jnp.float32),
        grid=(num_blocks,),
        in_specs=[in_spec, in_spec, in_spec],
        out_specs=out_spec,
        compiler_params=pltpu.CompilerParams(
            dimension_semantics=("parallel",),
            vmem_limit_bytes=_VMEM_LIMIT_BYTES,
        ),
        cost_estimate=cost,
    )(x2, y2, m2)

    inv_n = jnp.float32(1.0) / jnp.float32(n_elem)
    sum_masked = jnp.sum(parts[:, :SUBLANES, :])
    sum_plain = jnp.sum(parts[:, SUBLANES:, :])
    return sum_masked * inv_n + jnp.float32(0.1) * (sum_plain * inv_n)


if __name__ == "__main__":
    key = jax.random.PRNGKey(0)
    kx, ky, km = jax.random.split(key, 3)

    # NCHW, small shapes
    shape = (2, 4, 16, 16)
    x = jax.random.normal(kx, shape, dtype=jnp.float32)
    y = jax.random.normal(ky, shape, dtype=jnp.float32)
    mask = (jax.random.uniform(km, shape) > 0.5).astype(jnp.float32)

    loss = mask4_loss(x, y, mask)
    loss = jax.block_until_ready(loss)

    # reference check (plain JAX, mirrors torch.nn.L1Loss mean reduction)
    ref = jnp.mean(jnp.abs(x * mask - y * mask)) + 0.1 * jnp.mean(jnp.abs(x - y))
    assert jnp.allclose(loss, ref, rtol=1e-5, atol=1e-6), (loss, ref)

    print("KERNEL_OK")
</pallas_src>

<mosaic_0001>
module attributes {stable_mosaic.version = 11 : i64} {
  func.func @kernel(%arg0: i32, %arg1: memref<8x128xf32, #tpu.memory_space<vmem>>, %arg2: memref<8x128xf32, #tpu.memory_space<vmem>>, %arg3: memref<8x128xf32, #tpu.memory_space<vmem>>, %arg4: memref<1x16x128xf32, #tpu.memory_space<vmem>>) attributes {dimension_semantics = [#tpu.dimension_semantics<parallel>], iteration_bounds = array<i64: 2>, scalar_prefetch = 0 : i64, scratch_operands = 0 : i64, tpu.core_type = #tpu.core_type<tc>, window_params = [{transform_indices = @transform_0, window_bounds = array<i64: 8, 128>}, {transform_indices = @transform_1, window_bounds = array<i64: 8, 128>}, {transform_indices = @transform_2, window_bounds = array<i64: 8, 128>}, {transform_indices = @transform_3, window_bounds = array<i64: 1, 16, 128>}]} {
    %c0 = arith.constant 0 : index
    %c0_0 = arith.constant 0 : index
    %0 = vector.load %arg1[%c0, %c0_0] : memref<8x128xf32, #tpu.memory_space<vmem>>, vector<8x128xf32>
    %c0_1 = arith.constant 0 : index
    %c0_2 = arith.constant 0 : index
    %1 = vector.load %arg2[%c0_1, %c0_2] : memref<8x128xf32, #tpu.memory_space<vmem>>, vector<8x128xf32>
    %c0_3 = arith.constant 0 : index
    %c0_4 = arith.constant 0 : index
    %2 = vector.load %arg3[%c0_3, %c0_4] : memref<8x128xf32, #tpu.memory_space<vmem>>, vector<8x128xf32>
    %3 = arith.mulf %0, %2 : vector<8x128xf32>
    %4 = arith.mulf %1, %2 : vector<8x128xf32>
    %5 = arith.subf %3, %4 : vector<8x128xf32>
    %6 = math.absf %5 : vector<8x128xf32>
    %7 = arith.subf %0, %1 : vector<8x128xf32>
    %8 = math.absf %7 : vector<8x128xf32>
    %9 = vector.shape_cast %6 : vector<8x128xf32> to vector<1x8x128xf32>
    %cst = arith.constant dense<0.000000e+00> : vector<8x128xf32>
    %10 = vector.multi_reduction <add>, %9, %cst [0] : vector<1x8x128xf32> to vector<8x128xf32>
    %11 = vector.shape_cast %8 : vector<8x128xf32> to vector<1x8x128xf32>
    %cst_5 = arith.constant dense<0.000000e+00> : vector<8x128xf32>
    %12 = vector.multi_reduction <add>, %11, %cst_5 [0] : vector<1x8x128xf32> to vector<8x128xf32>
    %c0_6 = arith.constant 0 : index
    %c0_7 = arith.constant 0 : index
    %c0_8 = arith.constant 0 : index
    %13 = vector.load %arg4[%c0_6, %c0_7, %c0_8] : memref<1x16x128xf32, #tpu.memory_space<vmem>>, vector<1x8x128xf32>
    %14 = vector.shape_cast %13 : vector<1x8x128xf32> to vector<8x128xf32>
    %15 = vector.shape_cast %10 : vector<8x128xf32> to vector<1x8x128xf32>
    tpu.vector_store %arg4[%c0_6, %c0_7, %c0_8], %15 {strides = array<i32>} : memref<1x16x128xf32, #tpu.memory_space<vmem>>, vector<1x8x128xf32>,
    %c0_9 = arith.constant 0 : index
    %c8 = arith.constant 8 : index
    %c0_10 = arith.constant 0 : index
    %16 = vector.load %arg4[%c0_9, %c8, %c0_10] : memref<1x16x128xf32, #tpu.memory_space<vmem>>, vector<1x8x128xf32>
    %17 = vector.shape_cast %16 : vector<1x8x128xf32> to vector<8x128xf32>
    %18 = vector.shape_cast %12 : vector<8x128xf32> to vector<1x8x128xf32>
    tpu.vector_store %arg4[%c0_9, %c8, %c0_10], %18 {strides = array<i32>} : memref<1x16x128xf32, #tpu.memory_space<vmem>>, vector<1x8x128xf32>,
    return
  }
  func.func @transform_0(%arg0: i32) -> (i32, i32) {
    %c0_i32 = arith.constant 0 : i32
    %c0_i32_0 = arith.constant 0 : i32
    return %arg0, %c0_i32 : i32, i32
  }
  func.func @transform_1(%arg0: i32) -> (i32, i32) {
    %c0_i32 = arith.constant 0 : i32
    %c0_i32_0 = arith.constant 0 : i32
    return %arg0, %c0_i32 : i32, i32
  }
  func.func @transform_2(%arg0: i32) -> (i32, i32) {
    %c0_i32 = arith.constant 0 : i32
    %c0_i32_0 = arith.constant 0 : i32
    return %arg0, %c0_i32 : i32, i32
  }
  func.func @transform_3(%arg0: i32) -> (i32, i32, i32) {
    %c0_i32 = arith.constant 0 : i32
    %c0_i32_0 = arith.constant 0 : i32
    %c0_i32_1 = arith.constant 0 : i32
    return %arg0, %c0_i32, %c0_i32_0 : i32, i32, i32
  }
}

</mosaic_0001>

<bundles_post_ra>
// kernel: tpu_custom_call.1
= control target key start
LH: loop header
LB: loop body
LE: loop exit
PB: predicated region body
PF: predicated region fallthrough
CT: control target
= control target key end

     0   :  { %s898_s0 = inlined_call_operand.hbm [shape: f32[16,128], index: 0, kind: input, shape index: {}]   ;;  %s899_s1 = inlined_call_operand.hbm [shape: f32[16,128], index: 1, kind: input, shape index: {}]   ;;  %s900_s2 = inlined_call_operand.hbm [shape: f32[16,128], index: 2, kind: input, shape index: {}]   ;;  %s901_s3 = inlined_call_operand.hbm [shape: f32[2,16,128], index: 3, kind: output, shape index: {}]  }
   0x1   :  { %906 = sst [smem:[#allocation12_spill]] %s899_s1 }
   0x2   :  { %8 = vsyncpa [#allocation3], 0 }
   0x3   :  { %10 = vsyncpa [#allocation3 + $0x1], 0 }
   0x4   :  { %11 = vsyncpa [#allocation6], 0 }
   0x5   :  { %13 = vsyncpa [#allocation6 + $0x1], 0 }
   0x6   :  { %14 = vsyncpa [#allocation4], 0 }
   0x7   :  { %16 = vsyncpa [#allocation4 + $0x1], 0  ;;  %s666_s12 = smov 0   ;;  %s668_s13 = smov 0  }
   0x8   :  { %s670_s14 = smov 0   ;;  %s672_s15 = smov 0  }
   0x9 LB: > { %s687_s16 = sadd.s32 4294967295, %s638_s15   ;;  %s400_s17 = sadd.s32 4294967294, %s638_s15   ;;  %s638_s15 = sphi %s672_s15, %s925_s15   ;;  %s634_s14 = sphi %s670_s14, %s924_s14   ;;  %s630_s13 = sphi %s668_s13, %s923_s13   ;;  %s626_s12 = sphi %s666_s12, %s922_s12  }
   0xa   : > { %s691_s18 = sadd.s32 1, %s638_s15   ;;  %s29_s19 = sadd.s32 1, %s634_s14 }
   0xb   : > { %s26_s20 = ssub.s32 %s638_s15, %s691_s18  ;;  %p36_p0 = scmp.ne.s32.totalorder %s634_s14, %s630_s13 }
   0xc   : > { %p27_p1 = scmp.eq.s32.totalorder %s26_s20, 0  ;;  %p37_p2 = scmp.eq.s32.totalorder %s638_s15, 0 }
   0xd   : > { %p42_p3 = scmp.ne.s32.totalorder %s630_s13, %s626_s12  ;;  %p43_p4 = scmp.eq.s32.totalorder %s687_s16, 0 }
   0xe   : > { %s703_s21 = scalar_select %p27_p1, %s634_s14, %s29_s19  }
   0xf   : > { %p38_p5 = por %p37_p2, %p36_p0  ;;  %p705_p6 = por %p43_p4, %p42_p3 }
  0x10   : > { %p118_p7 = scmp.eq.s32.totalorder %s687_s16, 1  ;;  %p124_p8 = scmp.eq.s32.totalorder %s400_s17, 1 }
  0x11   : > { %s907_s22 = scalar_select %p705_p6, 1, 0 }
  0x12   : > { %p442_p10 = scmp.lt.s32.totalorder %s638_s15, 2  ;;  %p712_p11 = por %p118_p7, %p36_p0 }
  0x13   : > { %p716_p12 = por %p124_p8, %p42_p3  ;;  %s144_s25 = sand.u32 1, %s634_s14  }
  0x14   : > { %s908_s23 = scalar_select %p712_p11, 1, 0 }
  0x15   : > { %s909_s24 = scalar_select %p716_p12, 1, 0 }
  0x16   : > { %s722_s26 = sshll.u32 %s638_s15, 7  ;;  %s726_s27 = sshll.u32 %s144_s25, 3 }
  0x17   : > { %p728_p13 = pnand %p442_p10, %p38_p5  ;;  %s162_s29 = sand.u32 1, %s638_s15  }
  0x18   : > { %s911_s1 = sld [smem:[#allocation12_spill]]  ;;  %s166_s6 = scalar_lea.vmem [#allocation5], %s726_s27 }
  0x19   : > { %s910_s28 = scalar_select %p728_p13, 1, 0 }
  0x1a   : > { %s173_s7 = sshll.u32 %s166_s6, 4  ;;  %s743_s8 = scalar_lea.sflag [#allocation6], %s162_s29  ;;  %s740_s7 = int_to_ptr.vmem [resolvable:$true] %s173_s7 }
  0x1b   : > { %p749_p2 = pneg %p728_p13 }
  0x1e   : > { %s737_s5 = scalar_lea.hbm %s911_s1, %s722_s26  ;;  %s483_s19 = scalar_lea.hbm %s911_s1, 256 }
  0x1f   : > { %s478_s9 = scalar_lea.hbm %s737_s5, 128  ;;  %p484_p5 = scmp.lt.u32.totalorder %s737_s5, %s911_s1 }
  0x20   : > { %p479_p1 = scmp.ne.s32.totalorder %s737_s5, %s478_s9  ;;  %p485_p7 = scmp.lt.u32.totalorder %s483_s19, %s478_s9 }
  0x21   : > { %p487_p10 = scmp.lt.u32.totalorder %s478_s9, %s737_s5 }
  0x22   : > { %p481_p3 = pnand %p749_p2, %p479_p1  ;;  %p486_p8 = por %p485_p7, %p484_p5 }
  0x24   : > { %p482_p4 = pneg %p481_p3  ;;  %p488_p9 = por %p487_p10, %p486_p8 }
  0x26   : > { %p489_p0 = pnand %p488_p9, %p482_p4 }
  0x28   : > { %492 = shalt.err (!%p489_p0)
}
  0x29   : > { %s493_s29 = scalar_lea.vmem %s740_s7, 128  ;;  %s640_s4 = smov [#allocation5]  }
  0x2a   : > { %p494_p1 = scmp.ne.s32.totalorder %s740_s7, %s493_s29  ;;  %s498_s6 = sshll.u32 %s640_s4, 4  ;;  %s499_s6 = int_to_ptr.vmem [resolvable:$false] %s498_s6 }
  0x2b   : > { %s500_s11 = scalar_lea.vmem %s499_s6, 256  ;;  %p501_p11 = scmp.lt.s32.totalorder %s740_s7, %s499_s6 }
  0x2c   : > { %p496_p3 = pnand %p494_p1, %p749_p2  ;;  %p502_p6 = scmp.lt.s32.totalorder %s500_s11, %s493_s29 }
  0x2e   : > { %p497_p12 = pneg %p496_p3  ;;  %p503_p5 = por %p502_p6, %p501_p11 }
  0x30   : > { %p504_p7 = pnand %p503_p5, %p497_p12 }
  0x32   : > { %507 = shalt.err (!%p504_p7)
}
  0x33   : > { %434 = dma.hbm_to_vmem [thread:$0]  (!%p728_p13), %s737_s5, 128, %s740_s7, %s743_s8  }
  0x34   : > { %p196_p9 = scmp.lt.s32.totalorder %s638_s15, 3  ;;  %s778_s19 = scalar_lea.hbm %s898_s0, %s722_s26 }
  0x35   : > { %p913_p6 = scmp.ge.s32.totalorder %s638_s15, 1  ;;  %s148_s30 = scalar_lea.vmem [#allocation2], %s726_s27 }
  0x36   : > { %s155_s29 = sshll.u32 %s148_s30, 4  ;;  %s145_s5 = scalar_lea.sflag [#allocation3], %s144_s25  ;;  %s156_s29 = int_to_ptr.vmem [resolvable:$true] %s155_s29 }
  0x37   : > { %p782_p11 = pnand %p913_p6, %p196_p9  ;;  %s508_s7 = scalar_lea.hbm %s778_s19, 128 }
  0x38   : > { %p509_p12 = scmp.ne.s32.totalorder %s778_s19, %s508_s7  ;;  %s513_s11 = scalar_lea.hbm %s898_s0, 256 }
  0x39   : > { %s914_s20 = scalar_select %p782_p11, 1, 0 }
  0x3a   : > { %p511_p0 = pnand %p509_p12, %p749_p2  ;;  %p514_p8 = scmp.lt.u32.totalorder %s778_s19, %s898_s0 }
  0x3b   : > { %p515_p10 = scmp.lt.u32.totalorder %s513_s11, %s508_s7  ;;  %p517_p3 = scmp.lt.u32.totalorder %s508_s7, %s778_s19 }
  0x3c   : > { %p512_p4 = pneg %p511_p0 }
  0x3d   : > { %p516_p1 = por %p515_p10, %p514_p8 }
  0x3f   : > { %p518_p5 = por %p517_p3, %p516_p1 }
  0x41   : > { %p519_p7 = pnand %p518_p5, %p512_p4 }
  0x43   : > { %522 = shalt.err (!%p519_p7)
}
  0x44   : > { %s523_s25 = scalar_lea.vmem %s156_s29, 128  ;;  %s641_s30 = smov [#allocation2]  }
  0x45   : > { %p524_p9 = scmp.ne.s32.totalorder %s156_s29, %s523_s25  ;;  %s528_s1 = sshll.u32 %s641_s30, 4  ;;  %s529_s1 = int_to_ptr.vmem [resolvable:$false] %s528_s1 }
  0x46   : > { %s530_s4 = scalar_lea.vmem %s529_s1, 256  ;;  %p531_p0 = scmp.lt.s32.totalorder %s156_s29, %s529_s1 }
  0x47   : > { %p526_p6 = pnand %p524_p9, %p749_p2  ;;  %p532_p11 = scmp.lt.s32.totalorder %s530_s4, %s523_s25 }
  0x49   : > { %p527_p12 = pneg %p526_p6  ;;  %p533_p13 = por %p532_p11, %p531_p0 }
  0x4b   : > { %p534_p8 = pnand %p533_p13, %p527_p12 }
  0x4d   : > { %537 = shalt.err (!%p534_p8)
}
  0x4e   : > { %p915_p10 = scmp.ne.s32.totalorder %s910_s28, 0  ;;  %s810_s11 = scalar_lea.hbm %s900_s2, %s722_s26 }
  0x4f   : > { %s184_s1 = scalar_lea.vmem [#allocation7], %s726_s27  ;;  %s538_s17 = scalar_lea.hbm %s810_s11, 128 }
  0x50   : > { %431 = dma.hbm_to_vmem [thread:$0]  (!%p915_p10), %s778_s19, 128, %s156_s29, %s145_s5  }
  0x51   : > { %s191_s9 = sshll.u32 %s184_s1, 4  ;;  %p539_p13 = scmp.ne.s32.totalorder %s810_s11, %s538_s17  ;;  %s192_s9 = int_to_ptr.vmem [resolvable:$true] %s191_s9 }
  0x52   : > { %s543_s19 = scalar_lea.hbm %s900_s2, 256  ;;  %p544_p1 = scmp.lt.u32.totalorder %s810_s11, %s900_s2 }
  0x53   : > { %p541_p11 = pnand %p539_p13, %p749_p2  ;;  %p545_p3 = scmp.lt.u32.totalorder %s543_s19, %s538_s17 }
  0x54   : > { %p547_p7 = scmp.lt.u32.totalorder %s538_s17, %s810_s11 }
  0x55   : > { %p542_p4 = pneg %p541_p11  ;;  %p546_p5 = por %p545_p3, %p544_p1 }
  0x57   : > { %p548_p9 = por %p547_p7, %p546_p5 }
  0x59   : > { %p549_p6 = pnand %p548_p9, %p542_p4 }
  0x5b   : > { %552 = shalt.err (!%p549_p6)
}
  0x5c   : > { %s553_s26 = scalar_lea.vmem %s192_s9, 128  ;;  %s642_s27 = smov [#allocation7]  }
  0x5d   : > { %p554_p12 = scmp.ne.s32.totalorder %s192_s9, %s553_s26  ;;  %s558_s4 = sshll.u32 %s642_s27, 4  ;;  %s559_s4 = int_to_ptr.vmem [resolvable:$false] %s558_s4 }
  0x5e   : > { %s560_s7 = scalar_lea.vmem %s559_s4, 256  ;;  %p561_p13 = scmp.lt.s32.totalorder %s192_s9, %s559_s4 }
  0x5f   : > { %p556_p0 = pnand %p554_p12, %p749_p2  ;;  %p562_p11 = scmp.lt.s32.totalorder %s560_s7, %s553_s26 }
  0x61   : > { %p557_p8 = pneg %p556_p0  ;;  %p563_p10 = por %p562_p11, %p561_p13 }
  0x63   : > { %p564_p1 = pnand %p563_p10, %p557_p8 }
  0x65   : > { %567 = shalt.err (!%p564_p1)
}
  0x66   : > { %p916_p3 = scmp.ne.s32.totalorder %s910_s28, 0  ;;  %p917_p4 = scmp.ne.s32.totalorder %s914_s20, 0 }
  0x67   : > { %s834_s10 = sand.u32 (!%p917_p4), 1, %s630_s13   ;;  %p918_p2 = scmp.ne.s32.totalorder (!%p917_p4), %s907_s22, 0 }
  0x68   : > { %437 = dma.hbm_to_vmem [thread:$0]  (!%p916_p3), %s810_s11, 128, %s192_s9, %s743_s8  }
  0x69   : > { %200 = sbr.rel (%p917_p4) target bundleno = 144 (0x90), region = 32  ;;  %s410_s6 = sshll.u32 (!%p917_p4), %s834_s10, 3 }
  0x6a   : > { %s203_s1 = scalar_lea.sflag (!%p917_p4), [#allocation3], %s834_s10  ;;  %s206_s17 = scalar_lea.vmem (!%p917_p4), [#allocation2], %s410_s6 }
  0x70   : > { %613 = dma.done.wait (%p918_p2), %s203_s1, 128  }
  0x71   : > { %615 = vsyncadd (%p918_p2), %s203_s1, 4294967168  ;;  %s211_s28 = sand.u32 1, %s687_s16   ;;  %s215_s20 = scalar_lea.vmem [#allocation5], %s410_s6 }
  0x72   : > { %s212_s8 = scalar_lea.sflag [#allocation6], %s211_s28 }
  0x73   : > { %617 = dma.done.wait (%p918_p2), %s212_s8, 256  }
  0x74   : > { %619 = vsyncadd (%p918_p2), %s212_s8, 4294967040  ;;  %s413_s11 = sshll.u32 %s834_s10, 4  ;;  %v257_v0 = vld [vmem:[%s206_s17] sm:$0xff]  ;;  %v258_v1 = vld [vmem:[%s215_s20] sm:$0xff]  ;;  %s224_s9 = scalar_lea.vmem [#allocation7], %s410_s6 }
  0x75   : > { %v259_v2 = vld [vmem:[%s224_s9] sm:$0xff]  ;;  %s256_s25 = scalar_lea.vmem [#allocation8], %s413_s11  ;;  %v264_v5 = vsub.f32 %v257_v0, %v258_v1  ;;  %s419_s19 = sshll.u32 %s687_s16, 8 }
  0x76   : > { %v260_v3 = vmul.f32 %v259_v2, %v257_v0  ;;  %v261_v4 = vmul.f32 %v259_v2, %v258_v1  ;;  %s284_s30 = sshll.u32 %s256_s25, 4  ;;  %s854_s5 = scalar_lea.hbm %s901_s3, %s419_s19  ;;  %s849_s30 = int_to_ptr.vmem [resolvable:$true] %s284_s30 }
  0x77   : > { %v265_v7 = vand.u32 2147483647, %v264_v5  ;;  %s271_s26 = scalar_lea.sflag [#allocation4], %s834_s10  ;;  %s568_s27 = scalar_lea.vmem %s849_s30, 256 }
  0x78   : > { %v262_v6 = vsub.f32 %v260_v3, %v261_v4  ;;  %p569_p10 = scmp.ne.s32.totalorder %s849_s30, %s568_s27  ;;  %p919_p5 = scmp.ne.s32.totalorder %s908_s23, 0 }
  0x79   : > { %269 = vst [vmem:[%s256_s25 + $0x8] sm:$0xff] %v265_v7  ;;  %s643_s16 = smov [#allocation8]  }
  0x7a   : > { %v263_v8 = vand.u32 2147483647, %v262_v6  ;;  %p570_p7 = pnand %p569_p10, %p919_p5  ;;  %s572_s4 = sshll.u32 %s643_s16, 4  ;;  %s573_s4 = int_to_ptr.vmem [resolvable:$false] %s572_s4 }
  0x7b   : > { %s574_s7 = scalar_lea.vmem %s573_s4, 512  ;;  %p575_p6 = scmp.lt.s32.totalorder %s849_s30, %s573_s4 }
  0x7c   : > { %268 = vst [vmem:[%s256_s25] sm:$0xff] %v263_v8  ;;  %p571_p9 = pneg %p570_p7  ;;  %p576_p12 = scmp.lt.s32.totalorder %s574_s7, %s568_s27 }
  0x7e   : > { %p577_p0 = por %p576_p12, %p575_p6 }
  0x80   : > { %p578_p8 = pnand %p577_p0, %p571_p9 }
  0x82   : > { %581 = shalt.err (!%p578_p8)
}
  0x83   : > { %s582_s6 = scalar_lea.hbm %s854_s5, 256  ;;  %s586_s28 = scalar_lea.hbm %s901_s3, 512 }
  0x84   : > { %p583_p13 = scmp.ne.s32.totalorder %s854_s5, %s582_s6  ;;  %p587_p3 = scmp.lt.u32.totalorder %s854_s5, %s901_s3 }
  0x85   : > { %p588_p4 = scmp.lt.u32.totalorder %s586_s28, %s582_s6  ;;  %p590_p10 = scmp.lt.u32.totalorder %s582_s6, %s854_s5 }
  0x86   : > { %p584_p11 = pnand %p583_p13, %p919_p5 }
  0x87   : > { %p589_p2 = por %p588_p4, %p587_p3 }
  0x88   : > { %p585_p1 = pneg %p584_p11 }
  0x89   : > { %p591_p7 = por %p590_p10, %p589_p2 }
  0x8b   : > { %p592_p9 = pnand %p591_p7, %p585_p1 }
  0x8d   : > { %595 = shalt.err (!%p592_p9)
}
  0x8e   : > { %s644_s11 = smov 128   ;;  %s645_s9 = smov 8  }
  0x8f   : > { %426 = dma.vmem_to_hbm [thread:$0]  (%p919_p5), %s849_s30, 256, %s854_s5, %s271_s26, %s644_s11, %s644_s11, %s645_s9  }
  0x90 PF: > { %s299_s25 = sand.u32 1, %s626_s12   ;;  %p920_p6 = scmp.ne.s32.totalorder %s909_s24, 0 }
  0x91   : > { %p921_p12 = scmp.ge.s32.totalorder %s638_s15, 2  ;;  %s300_s19 = scalar_lea.sflag [#allocation4], %s299_s25 }
  0x93   : > { %p439_p0 = pnand %p921_p12, %p920_p6 }
  0x95   : > { %621 = dma.done.wait (!%p439_p0), %s300_s19, 256  }
  0x96   : > { %623 = vsyncadd (!%p439_p0), %s300_s19, 4294967040  ;;  %p19_p8 = scmp.ge.s32.totalorder %s691_s18, 4   ;;  %s922_s12 = smov %s630_s13 }
  0x97   : > { %s923_s13 = smov %s634_s14  ;;  %s924_s14 = smov %s703_s21 }
  0x98   : > { %s925_s15 = smov %s691_s18  ;;  %21 = sbr.rel (!%p19_p8) target bundleno = 9 (0x9), region = 101 }
  0x9f   :  { %305 = vsyncpa [#allocation3], 1 }
  0xa0   :  { %307 = vsyncpa [#allocation3 + $0x1], 1 }
  0xa1   :  { %308 = vsyncpa [#allocation6], 1 }
  0xa2   :  { %310 = vsyncpa [#allocation6 + $0x1], 1 }
  0xa3   :  { %311 = vsyncpa [#allocation4], 1 }
  0xa4   :  { %313 = vsyncpa [#allocation4 + $0x1], 1 }

</bundles_post_ra>
